<compile_context>
chip_gen: v7x
topology: tpu7x:2x2x1
jax: 0.10.0
libtpu: 0.0.40
codegen_flags: <defaults>
</compile_context>

<pallas_src>
import math

import numpy as np
import jax
import jax.numpy as jnp
from jax import lax
from jax.experimental import pallas as pl
from jax.experimental.pallas import tpu as pltpu


def _round_up(x, m):
    return ((x + m - 1) // m) * m


def _acdc_matmul_kernel(w_ref, p_ref, o_ref):
    # One lane-dense MXU pass per grid step:
    #   (co2_pad, kkr) @ (kkr, s_tile) -> (co2_pad, s_tile), f32 accumulation.
    # Bias is already folded into w_ref (it multiplies the trailing ones-row of p_ref).
    o_ref[...] = jnp.dot(w_ref[...], p_ref[...],
                         preferred_element_type=jnp.float32)


def _vmem_budget_bytes():
    # Per-generation VMEM with ~25% headroom for compiler scratch / semaphores:
    # v5e/v6e: 128 MiB -> ~96 MiB budget; v7x: 64 MiB -> ~48 MiB budget.
    try:
        cap = int(pltpu.get_tpu_info().vmem_capacity_bytes)
    except Exception:
        cap = 64 * 1024 * 1024          # conservative fallback (v7x per-TC VMEM)
    return (cap * 3) // 4


def acdc2d_pallas(x, conv_w, A, D, bias, perm, *, in_f, out_f, kernel_size,
                  group_size=8, stride=1, padding=0, mxu_dtype=jnp.bfloat16):
    """x: (N, in_f, H, W) float32 (NCHW). Returns (N, out_f, Ho, Wo) complex64.

    mxu_dtype=bfloat16 (default) halves streamed HBM bytes and runs the MXU at full
    rate on v5e/v6e/v7x; accumulation stays f32.  Use jnp.float32 for tight numerics.
    """
    N, Cx, H, W = x.shape
    assert Cx == in_f
    K = kernel_size
    num_kernels = int(math.ceil(out_f / group_size))
    in_dpc_k = int(math.ceil(in_f / num_kernels))
    working_size = group_size * num_kernels          # Cw (circulant size)
    working_in = in_dpc_k * num_kernels              # Cin after channel pad
    cin_g = working_in // num_kernels
    cout_g = working_size // num_kernels

    Ho = (H + 2 * padding - K) // stride + 1
    Wo = (W + 2 * padding - K) // stride + 1
    HoWo = Ho * Wo

    # ---------- glue (numpy, float64): fold conv weight * A * circulant + bias ----------
    # dense (block-diag over groups) conv weight, row index = (dy*K+dx)*Cin + cin.
    w_np = np.asarray(conv_w, np.float64)                     # (Cw, cin_g, K, K)
    w_full = np.zeros((K, K, working_in, working_size), np.float64)
    for g in range(num_kernels):
        wg = w_np[g * cout_g:(g + 1) * cout_g]                # (cout_g, cin_g, K, K)
        w_full[:, :, g * cin_g:(g + 1) * cin_g,
               g * cout_g:(g + 1) * cout_g] = np.transpose(wg, (2, 3, 1, 0))
    kkc = K * K * working_in
    w_full = w_full.reshape(kkc, working_size)

    # circulant M = (1/C) F^H diag(D) F, with perm gather, [:out_f] slice, 1/sqrt(out_f)
    C = working_size
    kk = np.arange(C)
    Fm = np.exp(-2j * np.pi * np.outer(kk, kk) / C)
    Fi = np.exp(2j * np.pi * np.outer(kk, kk) / C) / C
    M = Fi @ np.diag(np.asarray(D, np.float64)) @ Fm          # (C, C) complex
    perm_np = np.asarray(perm)
    norm = math.sqrt(out_f)
    Mp = M[perm_np[:out_f], :] / norm                         # (out_f, Cw)

    # fold A-scale + circulant (real|imag) into the conv weight -> (kkc, 2*out_f)
    a_np = np.asarray(A, np.float64).reshape(working_size)
    T = a_np[:, None] * np.concatenate([np.real(Mp).T, np.imag(Mp).T], axis=1)
    w_fused = w_full @ T                                      # (kkc, co2)

    # bias (real only) as an extra contraction row, driven by a ones-row in P
    co2 = 2 * out_f
    b_row = np.concatenate([np.asarray(bias, np.float64)[perm_np[:out_f]] / norm,
                            np.zeros(out_f)])
    w_total = np.vstack([w_fused, b_row[None, :]])            # (kkc+1, co2)

    # pad to clean sublane multiples (16 covers bf16 packing; harmless for f32)
    kkr = _round_up(kkc + 1, 16)
    co2_pad = _round_up(co2, 16)
    w_total = np.pad(w_total, ((0, kkr - (kkc + 1)), (0, co2_pad - co2)))
    w_t = jnp.asarray(np.ascontiguousarray(w_total.T).astype(np.float32)).astype(mxu_dtype)

    # ---------- glue (JAX): im2col, batch-major so NO transposes around the kernel ------
    z = jnp.pad(x.astype(jnp.float32),
                ((0, 0), (0, working_in - in_f), (0, 0), (0, 0)))       # channel pad (NCHW)
    z = jnp.pad(z, ((0, 0), (0, 0), (padding, padding), (padding, padding)))
    z = z.astype(mxu_dtype)                                   # narrow early: halves im2col HBM
    taps = []
    for dy in range(K):
        for dx in range(K):
            taps.append(z[:, :, dy:dy + stride * (Ho - 1) + 1:stride,
                          dx:dx + stride * (Wo - 1) + 1:stride])        # (N, Cin, Ho, Wo)
    P = jnp.stack(taps, axis=1).reshape(N, kkc, HoWo)                   # rows = tap*Cin + c
    P = jnp.concatenate([P, jnp.ones((N, 1, HoWo), mxu_dtype)], axis=1)

    # ---------- tile sizing from the VMEM budget (dtype- and generation-aware) ----------
    in_bytes = np.dtype(mxu_dtype).itemsize
    budget = _vmem_budget_bytes()
    w_bytes = co2_pad * kkr * in_bytes                    # resident weight (2 pipeline buffers)
    per_lane = kkr * in_bytes + co2_pad * 4               # streamed P column + f32 out column
    s_tile = ((budget - 2 * w_bytes) // (2 * per_lane)) // 128 * 128
    s_tile = max(128, min(int(s_tile), 8192, _round_up(HoWo, 128)))
    if N == 1 and HoWo > 128:
        # keep >= 2 grid steps so v7x's two TensorCores both get work
        s_tile = max(128, min(s_tile, _round_up(-(-HoWo // 2), 128)))
    howo_pad = _round_up(HoWo, s_tile)

    P = jnp.pad(P, ((0, 0), (0, kkr - (kkc + 1)), (0, howo_pad - HoWo)))

    grid = (N, howo_pad // s_tile)
    out = pl.pallas_call(
        _acdc_matmul_kernel,
        out_shape=jax.ShapeDtypeStruct((N, co2_pad, howo_pad), jnp.float32),
        grid=grid,
        in_specs=[
            pl.BlockSpec((co2_pad, kkr), lambda n, t: (0, 0)),           # fused weight, resident
            pl.BlockSpec((None, kkr, s_tile), lambda n, t: (n, 0, t)),   # patch tile, lane-dense
        ],
        out_specs=pl.BlockSpec((None, co2_pad, s_tile), lambda n, t: (n, 0, t)),
        compiler_params=pltpu.CompilerParams(
            dimension_semantics=("parallel", "parallel"),
            vmem_limit_bytes=budget),
    )(w_t, P)

    # ---------- glue: split real|imag; already batch-major, just reshape ----------------
    out = out[:, :co2, :HoWo].reshape(N, co2, Ho, Wo)
    return lax.complex(out[:, :out_f], out[:, out_f:])        # (N, out_f, Ho, Wo) complex64


# ----------------------------- numpy reference --------------------------------
def reference_numpy(x, conv_w, A, D, bias, perm, *, in_f, out_f, kernel_size,
                    group_size, stride, padding):
    K = kernel_size
    num_kernels = int(math.ceil(out_f / group_size))
    in_dpc_k = int(math.ceil(in_f / num_kernels))
    working_size = group_size * num_kernels
    working_in = in_dpc_k * num_kernels
    cin_g = working_in // num_kernels
    cout_g = working_size // num_kernels

    x = np.asarray(x, np.float64)
    N, _, H, W = x.shape
    z = np.zeros((N, working_in, H, W))
    z[:, :in_f] = x
    zp = np.pad(z, ((0, 0), (0, 0), (padding, padding), (padding, padding)))
    Ho = (H + 2 * padding - K) // stride + 1
    Wo = (W + 2 * padding - K) // stride + 1

    w = np.asarray(conv_w, np.float64)
    conv_out = np.zeros((N, working_size, Ho, Wo))
    for g in range(num_kernels):
        zin = zp[:, g * cin_g:(g + 1) * cin_g]
        wg = w[g * cout_g:(g + 1) * cout_g]
        for oy in range(Ho):
            for ox in range(Wo):
                patch = zin[:, :, oy * stride:oy * stride + K,
                            ox * stride:ox * stride + K]
                conv_out[:, g * cout_g:(g + 1) * cout_g, oy, ox] = \
                    np.einsum('ncij,ocij->no', patch, wg)

    zc = conv_out * np.asarray(A, np.float64)[None, :, None, None]
    zc = np.fft.fft(zc, axis=1)
    zc = zc * np.asarray(D, np.float64)[None, :, None, None]
    zc = np.fft.ifft(zc, axis=1)
    zc = zc + np.asarray(bias, np.float64)[None, :, None, None]
    perm_np = np.asarray(perm)
    return zc[:, perm_np][:, :out_f] / math.sqrt(out_f)


if __name__ == "__main__":
    # Small config consistent with the module:
    in_f, out_f, K, gs, stride, pad = 3, 12, 3, 8, 1, 1
    num_kernels = int(math.ceil(out_f / gs))
    in_dpc_k = int(math.ceil(in_f / num_kernels))
    working_size = gs * num_kernels        # 16
    working_in = in_dpc_k * num_kernels    # 4
    cin_g = working_in // num_kernels      # 2

    key = jax.random.PRNGKey(0)
    k1, k2, k3, k4, k5, k6 = jax.random.split(key, 6)
    x = jax.random.normal(k1, (2, in_f, 16, 16), jnp.float32)
    conv_w = jax.random.normal(k2, (working_size, cin_g, K, K), jnp.float32) * 0.1
    A = jax.random.uniform(k3, (working_size,), jnp.float32)     # torch.rand-like
    D = jax.random.uniform(k4, (working_size,), jnp.float32)
    bias = jax.random.uniform(k5, (working_size,), jnp.float32)
    perm = jax.random.permutation(k6, working_size)              # torch.randperm-like
    # NOTE: `self.convi` exists in __init__ but is unused in forward, so it is omitted.

    ref = reference_numpy(np.asarray(x), np.asarray(conv_w), np.asarray(A),
                          np.asarray(D), np.asarray(bias), np.asarray(perm),
                          in_f=in_f, out_f=out_f, kernel_size=K,
                          group_size=gs, stride=stride, padding=pad)

    # f32-streamed path: validates the algebraic folding bit-tightly.
    out32 = acdc2d_pallas(x, conv_w, A, D, bias, perm,
                          in_f=in_f, out_f=out_f, kernel_size=K,
                          group_size=gs, stride=stride, padding=pad,
                          mxu_dtype=jnp.float32)
    out32 = jax.block_until_ready(out32)
    assert out32.shape == (2, out_f, 16, 16), out32.shape
    assert out32.dtype == jnp.complex64, out32.dtype
    assert np.allclose(np.asarray(out32), ref, rtol=3e-4, atol=3e-4), \
        float(np.max(np.abs(np.asarray(out32) - ref)))

    # default bf16-streamed path (production perf config); looser tolerance accounts
    # for the 8-bit-mantissa operand rounding (accumulation is still f32).
    outbf = acdc2d_pallas(x, conv_w, A, D, bias, perm,
                          in_f=in_f, out_f=out_f, kernel_size=K,
                          group_size=gs, stride=stride, padding=pad)
    outbf = jax.block_until_ready(outbf)
    assert outbf.shape == (2, out_f, 16, 16), outbf.shape
    assert outbf.dtype == jnp.complex64, outbf.dtype
    assert np.allclose(np.asarray(outbf), ref, rtol=0, atol=3e-2), \
        float(np.max(np.abs(np.asarray(outbf) - ref)))

    print("KERNEL_OK")
</pallas_src>

<mosaic_0001>
module attributes {stable_mosaic.version = 11 : i64} {
  func.func @_acdc_matmul_kernel(%arg0: i32, %arg1: i32, %arg2: memref<32x48xf32, #tpu.memory_space<vmem>>, %arg3: memref<1x48x256xf32, #tpu.memory_space<vmem>>, %arg4: memref<1x32x256xf32, #tpu.memory_space<vmem>>) attributes {dimension_semantics = [#tpu.dimension_semantics<parallel>, #tpu.dimension_semantics<parallel>], iteration_bounds = array<i64: 2, 1>, scalar_prefetch = 0 : i64, scratch_operands = 0 : i64, tpu.core_type = #tpu.core_type<tc>, window_params = [{pipeline_mode = #tpu.pipeline_mode<synchronous>, transform_indices = @transform_0, window_bounds = array<i64: 32, 48>}, {transform_indices = @transform_1, window_bounds = array<i64: 1, 48, 256>}, {transform_indices = @transform_2, window_bounds = array<i64: 1, 32, 256>}]} {
    %c0 = arith.constant 0 : index
    %c0_0 = arith.constant 0 : index
    %0 = vector.load %arg2[%c0, %c0_0] : memref<32x48xf32, #tpu.memory_space<vmem>>, vector<32x48xf32>
    %c0_1 = arith.constant 0 : index
    %c0_2 = arith.constant 0 : index
    %c0_3 = arith.constant 0 : index
    %1 = vector.load %arg3[%c0_1, %c0_2, %c0_3] : memref<1x48x256xf32, #tpu.memory_space<vmem>>, vector<1x48x256xf32>
    %2 = vector.shape_cast %1 : vector<1x48x256xf32> to vector<48x256xf32>
    %cst = arith.constant dense<0.000000e+00> : vector<32x256xf32>
    %3 = tpu.matmul %0, %2, %cst {dimension_numbers = #tpu.dot_dimension_numbers<[1], [0], [0], [1], [0, 0, 1, 1], [], []>} : vector<32x48xf32>, vector<48x256xf32>, vector<32x256xf32> -> vector<32x256xf32>
    %c0_4 = arith.constant 0 : index
    %c0_5 = arith.constant 0 : index
    %c0_6 = arith.constant 0 : index
    %4 = vector.load %arg4[%c0_4, %c0_5, %c0_6] : memref<1x32x256xf32, #tpu.memory_space<vmem>>, vector<1x32x256xf32>
    %5 = vector.shape_cast %4 : vector<1x32x256xf32> to vector<32x256xf32>
    %6 = vector.shape_cast %3 : vector<32x256xf32> to vector<1x32x256xf32>
    tpu.vector_store %arg4[%c0_4, %c0_5, %c0_6], %6 {strides = array<i32>} : memref<1x32x256xf32, #tpu.memory_space<vmem>>, vector<1x32x256xf32>,
    return
  }
  func.func @transform_0(%arg0: i32, %arg1: i32) -> (i32, i32) {
    %c0_i32 = arith.constant 0 : i32
    %c0_i32_0 = arith.constant 0 : i32
    %c0_i32_1 = arith.constant 0 : i32
    return %c0_i32, %c0_i32_0 : i32, i32
  }
  func.func @transform_1(%arg0: i32, %arg1: i32) -> (i32, i32, i32) {
    %c0_i32 = arith.constant 0 : i32
    %c0_i32_0 = arith.constant 0 : i32
    return %arg0, %c0_i32, %arg1 : i32, i32, i32
  }
  func.func @transform_2(%arg0: i32, %arg1: i32) -> (i32, i32, i32) {
    %c0_i32 = arith.constant 0 : i32
    %c0_i32_0 = arith.constant 0 : i32
    return %arg0, %c0_i32, %arg1 : i32, i32, i32
  }
}

</mosaic_0001>

<bundles_post_ra>
// kernel: tpu_custom_call.1
= control target key start
LH: loop header
LB: loop body
LE: loop exit
PB: predicated region body
PF: predicated region fallthrough
CT: control target
= control target key end

     0   :  { %7 = vsyncpa [#allocation3], 0  ;;  %s943_s0 = inlined_call_operand.hbm [shape: f32[32,48], index: 0, kind: input, shape index: {}]   ;;  %s944_s1 = inlined_call_operand.hbm [shape: f32[2,48,256], index: 1, kind: input, shape index: {}]   ;;  %s945_s2 = inlined_call_operand.hbm [shape: f32[2,32,256], index: 2, kind: output, shape index: {}]  }
   0x1   :  { %8 = vsyncpa [#allocation6], 0 }
   0x2   :  { %10 = vsyncpa [#allocation6 + $0x1], 0 }
   0x3   :  { %11 = vsyncpa [#allocation4], 0 }
   0x4   :  { %13 = vsyncpa [#allocation4 + $0x1], 0  ;;  %s729_s9 = smov 0   ;;  %s731_s10 = smov 0  }
   0x5   :  { %s733_s11 = smov 0   ;;  %s735_s12 = smov 0  }
   0x6   :  { %s737_s13 = smov 0   ;;  %s739_s14 = smov 0  }
   0x7 LB: > { %s438_s15 = sadd.s32 4294967295, %s702_s14   ;;  %s439_s16 = sadd.s32 4294967294, %s702_s14   ;;  %s702_s14 = sphi %s739_s14, %s19_s14   ;;  %s698_s13 = sphi %s737_s13, %s968_s13   ;;  %s694_s12 = sphi %s735_s12, %s967_s12   ;;  %s690_s11 = sphi %s733_s11, %s966_s11   ;;  %s686_s10 = sphi %s731_s10, %s965_s10   ;;  %s682_s9 = sphi %s729_s9, %s964_s9  }
   0x8   : > { %p74_p0 = scmp.ne.s32.totalorder %s686_s10, %s682_s9  ;;  %p763_p1 = scmp.eq.s32.totalorder %s438_s15, 0 }
   0x9   : > { %p767_p2 = scmp.eq.s32.totalorder %s438_s15, 1  ;;  %p106_p3 = scmp.eq.s32.totalorder %s439_s16, 1 }
   0xa   : > { %s950_s17 = scalar_select %p763_p1, 1, 0 }
   0xb   : > { %s951_s18 = scalar_select %p767_p2, 1, 0 }
   0xc   : > { %p773_p4 = por %p763_p1, %p74_p0  ;;  %p440_p5 = scmp.ge.s32.totalorder %s702_s14, 1 }
   0xd   : > { %p778_p6 = por %p106_p3, %p74_p0  ;;  %p113_p7 = scmp.lt.s32.totalorder %s702_s14, 3 }
   0xe   : > { %s952_s19 = scalar_select %p773_p4, 1, 0 }
   0xf   : > { %s953_s20 = scalar_select %p778_p6, 1, 0 }
  0x10   : > { %p783_p8 = pnand %p440_p5, %p113_p7  ;;  %s704_s22 = smov [#allocation2]  }
  0x11   : > { %s125_s23 = sshll.u32 %s704_s22, 4  ;;  %s31_s25 = sadd.s32 1, %s698_s13  ;;  %s126_s23 = int_to_ptr.vmem [resolvable:$true] %s125_s23 }
  0x12   : > { %s954_s21 = scalar_select %p783_p8, 1, 0 }
  0x13   : > { %p486_p9 = pneg %p783_p8  ;;  %s558_s28 = scalar_lea.hbm %s943_s0, 512 }
  0x14   : > { %p559_p12 = scmp.ne.s32.totalorder %s943_s0, %s558_s28  ;;  %p565_p5 = scmp.lt.u32.totalorder %s558_s28, %s943_s0 }
  0x15   : > { %p792_p11 = pnand %p486_p9, %p763_p1 }
  0x17   : > { %p560_p13 = pneg %p792_p11 }
  0x19   : > { %p561_p0 = pnand %p560_p13, %p559_p12 }
  0x1b   : > { %p562_p3 = pneg %p561_p0 }
  0x1d   : > { %p567_p7 = pnand %p565_p5, %p562_p3 }
  0x1f   : > { %570 = shalt.err (!%p567_p7)
}
  0x20   : > { %s571_s5 = scalar_lea.vmem %s126_s23, 512  ;;  %p579_p4 = scmp.lt.s32.totalorder %s126_s23, %s126_s23 }
  0x21   : > { %p572_p9 = scmp.ne.s32.totalorder %s126_s23, %s571_s5  ;;  %p580_p1 = scmp.lt.s32.totalorder %s571_s5, %s571_s5 }
  0x23   : > { %p574_p10 = pnand %p572_p9, %p560_p13  ;;  %p581_p8 = por %p580_p1, %p579_p4 }
  0x25   : > { %p575_p6 = pneg %p574_p10 }
  0x27   : > { %p582_p2 = pnand %p581_p8, %p575_p6 }
  0x29   : > { %585 = shalt.err (!%p582_p2)
}
  0x2a   : > { %s705_s6 = smov 128   ;;  %s706_s7 = smov 8  }
  0x2b   : > { %489 = dma.hbm_to_vmem [thread:$0]  (!%p792_p11), %s943_s0, 512, %s126_s23, [#allocation3], %s705_s6, %s705_s6, %s706_s7  }
  0x2c   : > { %p33_p1 = scmp.ge.s32.totalorder %s31_s25, 2  ;;  %s61_s16 = sadd.s32 1, %s690_s11 }
  0x2d   : > { %p68_p2 = scmp.ne.s32.totalorder %s690_s11, %s686_s10  ;;  %p69_p4 = scmp.eq.s32.totalorder %s702_s14, 0 }
  0x2e   : > { %s970_s25 = smov (%p33_p1, %s31_s25), 0  ;;  %p956_p8 = scmp.ne.s32.totalorder %s951_s18, 0 }
  0x2f   : > { %p70_p6 = por %p69_p4, %p68_p2  ;;  %s56_s26 = ssub.s32 %s698_s13, %s970_s25 }
  0x30   : > { %p821_p10 = por %p956_p8, %p68_p2  ;;  %p499_p12 = scmp.lt.s32.totalorder %s702_s14, 2 }
  0x31   : > { %p59_p13 = scmp.eq.s32.totalorder %s56_s26, 0  ;;  %s139_s24 = sand.u32 1, %s690_s11  }
  0x32   : > { %s475_s27 = smul.u32 96, %s139_s24  ;;  %p833_p11 = pnand %p499_p12, %p70_p6 }
  0x33   : > { %s830_s28 = scalar_select %p59_p13, %s690_s11, %s61_s16  }
  0x34   : > { %s476_s23 = smul.u32 1536, %s698_s13  ;;  %s143_s29 = scalar_lea.vmem [#allocation5], %s475_s27 }
  0x35   : > { %s152_s30 = sshll.u32 %s143_s29, 4  ;;  %s844_s6 = scalar_lea.sflag [#allocation6], %s139_s24  ;;  %s842_s30 = int_to_ptr.vmem [resolvable:$true] %s152_s30 }
  0x36   : > { %s840_s5 = scalar_lea.hbm %s944_s1, %s476_s23  ;;  %p588_p3 = pneg %p833_p11 }
  0x37   : > { %s586_s7 = scalar_lea.hbm %s840_s5, 1536  ;;  %s591_s16 = scalar_lea.hbm %s944_s1, 3072 }
  0x38   : > { %p587_p0 = scmp.ne.s32.totalorder %s840_s5, %s586_s7  ;;  %p592_p9 = scmp.lt.u32.totalorder %s840_s5, %s944_s1 }
  0x39   : > { %p593_p1 = scmp.lt.u32.totalorder %s591_s16, %s586_s7  ;;  %p595_p4 = scmp.lt.u32.totalorder %s586_s7, %s840_s5 }
  0x3a   : > { %p589_p5 = pnand %p588_p3, %p587_p0 }
  0x3b   : > { %p594_p2 = por %p593_p1, %p592_p9 }
  0x3c   : > { %p590_p7 = pneg %p589_p5 }
  0x3d   : > { %p596_p6 = por %p595_p4, %p594_p2 }
  0x3f   : > { %p597_p8 = pnand %p596_p6, %p590_p7 }
  0x41   : > { %600 = shalt.err (!%p597_p8)
}
  0x42   : > { %s601_s24 = scalar_lea.vmem %s842_s30, 1536  ;;  %s707_s23 = smov [#allocation5]  }
  0x43   : > { %p602_p12 = scmp.ne.s32.totalorder %s842_s30, %s601_s24  ;;  %s606_s29 = sshll.u32 %s707_s23, 4  ;;  %s607_s29 = int_to_ptr.vmem [resolvable:$false] %s606_s29 }
  0x44   : > { %s608_s4 = scalar_lea.vmem %s607_s29, 3072  ;;  %p609_p5 = scmp.lt.s32.totalorder %s842_s30, %s607_s29 }
  0x45   : > { %p604_p13 = pnand %p602_p12, %p588_p3  ;;  %p610_p9 = scmp.lt.s32.totalorder %s608_s4, %s601_s24 }
  0x47   : > { %p605_p0 = pneg %p604_p13  ;;  %p611_p1 = por %p610_p9, %p609_p5 }
  0x49   : > { %p612_p2 = pnand %p611_p1, %p605_p0 }
  0x4b   : > { %615 = shalt.err (!%p612_p2)
}
  0x4c   : > { %s708_s18 = smov 256   ;;  %s709_s7 = smov 16  }
  0x4d   : > { %493 = dma.hbm_to_vmem [thread:$0]  (!%p833_p11), %s840_s5, 1536, %s842_s30, %s844_s6, %s708_s18, %s708_s18, %s709_s7  }
  0x4e   : > { %p959_p3 = scmp.ne.s32.totalorder %s954_s21, 0 }
  0x4f   : > { %p960_p7 = scmp.ne.s32.totalorder (!%p959_p3), %s950_s17, 0 }
  0x50   : > { %164 = sbr.rel (%p959_p3) target bundleno = 340 (0x154), region = 28 }
  0x57   : > { %669 = dma.done.wait (%p960_p7), [#allocation3], 512  }
  0x58   : > { %671 = vsyncadd (%p960_p7), [#allocation3], 4294966784  ;;  %s879_s8 = sand.u32 1, %s686_s10   ;;  %p961_p4 = scmp.ne.s32.totalorder %s952_s19, 0 }
  0x59   : > { %s477_s15 = smul.u32 96, %s879_s8  ;;  %s171_s16 = scalar_lea.sflag [#allocation6], %s879_s8 }
  0x5b   : > { %s174_s26 = scalar_lea.vmem [#allocation5], %s477_s15 }
  0x5c   : > { %673 = dma.done.wait (%p961_p4), %s171_s16, 1536  }
  0x5d   : > { %675 = vsyncadd (%p961_p4), %s171_s16, 4294965760  ;;  %v710_v0 = vmov 0.0   ;;  %v202_v1 = vld [vmem:[%s174_s26 + $0x8] sm:$0xff]  ;;  %v204_v2 = vld [vmem:[%s174_s26 + $0x18] sm:$0xff]  ;;  %vm213_vm0 = vcmask 392192   ;;  %s446_s17 = sshll.u32 %s879_s8, 6 }
  0x5e   : > { %290 = vmatprep.mubr.f32.mxu0 %v710_v0  ;;  %302 = vmatprep.mubr.f32.mxu1 %v710_v0  ;;  %v201_v3 = vld [vmem:[%s174_s26] sm:$0xff]  ;;  %v457_v4 = vpack.c.bf16 %v204_v2, %v202_v1  ;;  %v203_v5 = vld [vmem:[%s174_s26 + $0x10] sm:$0xff]  ;;  %v206_v6 = vld [vmem:[%s174_s26 + $0x28] sm:$0xff]  ;;  %s194_s19 = scalar_lea.vmem [#allocation7], %s446_s17  ;;  %s456_s30 = sshll.u32 %s694_s12, 10 }
  0x5f   : > { %v208_v7 = vld [vmem:[%s174_s26 + $0x38] sm:$0xff]  ;;  %v459_v8 = vpack.c.bf16 %v203_v5, %v201_v3  ;;  %v205_v10 = vld [vmem:[%s174_s26 + $0x20] sm:$0xff]  ;;  %v207_v11 = vld [vmem:[%s174_s26 + $0x30] sm:$0xff]  ;;  %s339_s21 = sshll.u32 %s194_s19, 4  ;;  %s894_s6 = scalar_lea.hbm %s945_s2, %s456_s30  ;;  %s889_s21 = int_to_ptr.vmem [resolvable:$true] %s339_s21 }
  0x60   : > { %v461_v9 = vpack.c.bf16 %v208_v7, %v206_v6  ;;  %v210_v12 = vld [vmem:[%s174_s26 + $0x48] sm:$0xff]  ;;  %458 = vmatprep.subr.bf16.mxu0 %v457_v4  ;;  %469 = vmatprep.subr.bf16.mxu1 %v457_v4  ;;  %v212_v13 = vld [vmem:[%s174_s26 + $0x58] sm:$0xff]  ;;  %v463_v14 = vpack.c.bf16 %v207_v11, %v205_v10  ;;  %v209_v16 = vld [vmem:[%s174_s26 + $0x40] sm:$0xff]  ;;  %s324_s12 = scalar_lea.sflag [#allocation4], %s879_s8  ;;  %s616_s27 = scalar_lea.vmem %s889_s21, 1024 }
  0x61   : > { %460 = vmatpush1.bf16.msra.mxu0 %v459_v8  ;;  %472 = vmatpush1.bf16.msra.mxu1 %v459_v8  ;;  %v465_v15 = vpack.c.bf16 %v212_v13, %v210_v12  ;;  %v211_v17 = vld [vmem:[%s174_s26 + $0x50] sm:$0xff]  ;;  %v197_v19 = vld [vmem:[#allocation2] sm:$0xff]  ;;  %v198_v21 = vld [vmem:[#allocation2 + $0x8] sm:$0xff]  ;;  %p617_p11 = scmp.ne.s32.totalorder %s889_s21, %s616_s27  ;;  %s711_s24 = smov [#allocation7]  }
  0x62   : > { %462 = vmatprep.subr.bf16.mxu0 %v461_v9  ;;  %470 = vmatprep.subr.bf16.mxu1 %v461_v9  ;;  %v467_v18 = vpack.c.bf16 %v211_v17, %v209_v16  ;;  %v199_v20 = vld [vmem:[#allocation2 + $0x10] sm:$0xff]  ;;  %v200_v22 = vld [vmem:[#allocation2 + $0x18] sm:$0xff]  ;;  %s620_s23 = sshll.u32 %s711_s24, 4  ;;  %s621_s23 = int_to_ptr.vmem [resolvable:$false] %s620_s23 }
  0x63   : > { %p618_p6 = pnand %p617_p11, %p821_p10  ;;  %s622_s29 = scalar_lea.vmem %s621_s23, 2048 }
  0x64   : > { %p623_p12 = scmp.lt.s32.totalorder %s889_s21, %s621_s23  ;;  %p624_p13 = scmp.lt.s32.totalorder %s622_s29, %s616_s27 }
  0x65   : > { %464 = vmatpush1.bf16.msra.mxu0 %v463_v14  ;;  %473 = vmatpush1.bf16.msra.mxu1 %v463_v14  ;;  %p619_p8 = pneg %p618_p6 }
  0x66   : > { %466 = vmatprep.subr.bf16.mxu0 %v465_v15  ;;  %471 = vmatprep.subr.bf16.mxu1 %v465_v15  ;;  %p625_p0 = por %p624_p13, %p623_p12 }
  0x68   : > { %p626_p5 = pnand %p625_p0, %p619_p8 }
  0x69   : > { %468 = vmatpush1.bf16.msra.mxu0 %v467_v18  ;;  %474 = vmatpush1.bf16.msra.mxu1 %v467_v18 }
  0x6c   : > { %447 = vmatmul.mubr.msk.f32.vlgmr.msra.gmra.mrb[0].mxu0 %vm213_vm0, %v197_v19  ;;  %449 = vmatmul.mubr.msk.f32.vlgmr.msra.gmra.mrb[0].mxu1 %vm213_vm0, %v199_v20 }
  0x6d   : > { %296 = vmatprep.mubr.f32.mxu0 %v710_v0  ;;  %308 = vmatprep.mubr.f32.mxu1 %v710_v0 }
  0x70   : > { %448 = vmatmul.mubr.msk.f32.gmra.mrb[2].mxu0 %vm213_vm0, %v198_v21  ;;  %450 = vmatmul.mubr.msk.f32.gmra.mrb[2].mxu1 %vm213_vm0, %v200_v22 }
 0x13f   : > { %v292_v23 = vpop.f32.mrb[0].mxu0  ;;  %v304_v24 = vpop.f32.mrb[0].mxu1 }
 0x140   : > { %315 = vst [vmem:[%s194_s19] sm:$0xff] %v292_v23  ;;  %319 = vst [vmem:[%s194_s19 + $0x20] sm:$0xff] %v304_v24  ;;  %v294_v25 = vpop.f32.mrb[1].mxu0  ;;  %v306_v26 = vpop.f32.mrb[1].mxu1 }
 0x141   : > { %316 = vst [vmem:[%s194_s19 + $0x8] sm:$0xff] %v294_v25  ;;  %320 = vst [vmem:[%s194_s19 + $0x28] sm:$0xff] %v306_v26 }
 0x143   : > { %v298_v27 = vpop.f32.mrb[2].mxu0  ;;  %v310_v28 = vpop.f32.mrb[2].mxu1 }
 0x144   : > { %317 = vst [vmem:[%s194_s19 + $0x10] sm:$0xff] %v298_v27  ;;  %321 = vst [vmem:[%s194_s19 + $0x30] sm:$0xff] %v310_v28  ;;  %v300_v29 = vpop.f32.mrb[3].mxu0  ;;  %v312_v30 = vpop.f32.mrb[3].mxu1 }
 0x145   : > { %318 = vst [vmem:[%s194_s19 + $0x18] sm:$0xff] %v300_v29  ;;  %322 = vst [vmem:[%s194_s19 + $0x38] sm:$0xff] %v312_v30 }
 0x146   : > { %629 = shalt.err (!%p626_p5)
}
 0x147   : > { %s630_s4 = scalar_lea.hbm %s894_s6, 1024  ;;  %s634_s15 = scalar_lea.hbm %s945_s2, 2048 }
 0x148   : > { %p631_p9 = scmp.ne.s32.totalorder %s894_s6, %s630_s4  ;;  %p635_p3 = scmp.lt.u32.totalorder %s894_s6, %s945_s2 }
 0x149   : > { %p636_p7 = scmp.lt.u32.totalorder %s634_s15, %s630_s4  ;;  %p638_p11 = scmp.lt.u32.totalorder %s630_s4, %s894_s6 }
 0x14a   : > { %p632_p1 = pnand %p631_p9, %p821_p10 }
 0x14b   : > { %p637_p4 = por %p636_p7, %p635_p3 }
 0x14c   : > { %p633_p2 = pneg %p632_p1 }
 0x14d   : > { %p639_p6 = por %p638_p11, %p637_p4 }
 0x14f   : > { %p640_p8 = pnand %p639_p6, %p633_p2 }
 0x151   : > { %643 = shalt.err (!%p640_p8)
}
 0x152   : > { %s712_s17 = smov 256   ;;  %s713_s19 = smov 16  }
 0x153   : > { %484 = dma.vmem_to_hbm [thread:$0]  (%p821_p10), %s889_s21, 1024, %s894_s6, %s324_s12, %s712_s17, %s712_s17, %s713_s19  }
 0x154 PF: > { %s354_s30 = sand.u32 1, %s682_s9   ;;  %p962_p12 = scmp.ne.s32.totalorder %s953_s20, 0 }
 0x155   : > { %p963_p13 = scmp.ge.s32.totalorder %s702_s14, 2  ;;  %s355_s3 = scalar_lea.sflag [#allocation4], %s354_s30 }
 0x157   : > { %p495_p0 = pnand %p963_p13, %p962_p12 }
 0x159   : > { %677 = dma.done.wait (!%p495_p0), %s355_s3, 1024  }
 0x15a   : > { %679 = vsyncadd (!%p495_p0), %s355_s3, 4294966272  ;;  %s19_s14 = sadd.s32 1, %s702_s14   ;;  %s964_s9 = smov %s686_s10 }
 0x15b   : > { %p16_p5 = scmp.ge.s32.totalorder %s19_s14, 4   ;;  %s965_s10 = smov %s690_s11 }
 0x15c   : > { %s966_s11 = smov %s830_s28  ;;  %s967_s12 = smov %s698_s13 }
 0x15d   : > { %s968_s13 = smov %s970_s25  ;;  %18 = sbr.rel (!%p16_p5) target bundleno = 7 (0x7), region = 78 }
 0x164   :  { %360 = vsyncpa [#allocation3], 1 }
 0x165   :  { %362 = vsyncpa [#allocation3 + $0x1], 1 }
 0x166   :  { %363 = vsyncpa [#allocation6], 1 }
 0x167   :  { %365 = vsyncpa [#allocation6 + $0x1], 1 }
 0x168   :  { %366 = vsyncpa [#allocation4], 1 }
 0x169   :  { %368 = vsyncpa [#allocation4 + $0x1], 1 }

</bundles_post_ra>
